<compile_context>
chip_gen: v7x
topology: tpu7x:2x2x1
jax: 0.10.0
libtpu: 0.0.40
codegen_flags: <defaults>
</compile_context>

<pallas_src>
import functools

import jax
import jax.numpy as jnp
from jax import lax
from jax.experimental import pallas as pl
from jax.experimental.pallas import tpu as pltpu

_LANE = 128
_SUBLANE = 8


def _round_up(n, m):
    return ((n + m - 1) // m) * m


def _mlp_kernel(x_ref, w1_ref, b1_ref, w2_ref, b2_ref, w3_ref, b3_ref, o_ref,
                *, row_chunk):
    """Full 3-layer MLP forward for one batch tile, entirely in VMEM."""
    w1 = w1_ref[...]
    b1 = b1_ref[...]
    w2 = w2_ref[...]
    b2 = b2_ref[...]
    w3 = w3_ref[...]
    b3 = b3_ref[...]

    def compute(x):
        # Linear 1 + ReLU  (MXU matmul, f32 accumulate; VPU add/max)
        h1 = jnp.maximum(
            jnp.dot(x, w1, preferred_element_type=jnp.float32) + b1, 0.0
        ).astype(w2.dtype)
        # Linear 2 + ReLU
        h2 = jnp.maximum(
            jnp.dot(h1, w2, preferred_element_type=jnp.float32) + b2, 0.0
        ).astype(w3.dtype)
        # Linear 3 (logits, no activation)
        return jnp.dot(h2, w3, preferred_element_type=jnp.float32) + b3

    tile_rows = x_ref.shape[0]
    n_chunks = tile_rows // row_chunk  # static (trace-time) value

    if n_chunks == 1:
        o_ref[...] = compute(x_ref[...]).astype(o_ref.dtype)
    else:
        # Chunk the compute so f32 intermediates fit the vreg file; the DMA'd
        # x tile stays large and efficient.
        def body(c, carry):
            r = pl.multiple_of(c * row_chunk, row_chunk)
            x = x_ref[pl.ds(r, row_chunk), :]
            o_ref[pl.ds(r, row_chunk), :] = compute(x).astype(o_ref.dtype)
            return carry

        lax.fori_loop(0, n_chunks, body, 0, unroll=True)


@functools.partial(jax.jit, static_argnames=("batch_tile",))
def discriminator_forward(x, params, batch_tile=None):
    """x: (B, input_dims).  params: dict of w1,b1,w2,b2,w3,b3 (w's are (in,out))."""
    B, D_in = x.shape
    D_hid = params["w1"].shape[1]
    D_out = params["w3"].shape[1]

    # Lane-pad all feature dims to multiples of 128.
    din_p = _round_up(D_in, _LANE)
    dhid_p = _round_up(D_hid, _LANE)
    dout_p = _round_up(D_out, _LANE)

    # Pick a large batch tile; pad B up to a multiple of it (no divisibility
    # assert).  Tiles > 256 rows are chunked inside the kernel.
    if batch_tile is None:
        batch_tile = min(_round_up(B, _SUBLANE), 512)
    if batch_tile > 256:
        batch_tile = _round_up(batch_tile, 256)
    else:
        batch_tile = _round_up(batch_tile, _SUBLANE)
    row_chunk = min(batch_tile, 256)
    b_p = _round_up(B, batch_tile)

    dt = x.dtype
    xp = jnp.zeros((b_p, din_p), dt).at[:B, :D_in].set(x)
    w1p = jnp.zeros((din_p, dhid_p), params["w1"].dtype).at[:D_in, :D_hid].set(params["w1"])
    b1p = jnp.zeros((1, dhid_p), params["b1"].dtype).at[:, :D_hid].set(params["b1"])
    w2p = jnp.zeros((dhid_p, dhid_p), params["w2"].dtype).at[:D_hid, :D_hid].set(params["w2"])
    b2p = jnp.zeros((1, dhid_p), params["b2"].dtype).at[:, :D_hid].set(params["b2"])
    w3p = jnp.zeros((dhid_p, dout_p), params["w3"].dtype).at[:D_hid, :D_out].set(params["w3"])
    b3p = jnp.zeros((1, dout_p), params["b3"].dtype).at[:, :D_out].set(params["b3"])

    kernel = functools.partial(_mlp_kernel, row_chunk=row_chunk)

    # Weights / biases are small: load full arrays, same block for every step.
    # (Single-buffering them via pipeline_mode=pl.Buffered(1) would halve their
    #  resident VMEM; negligible at these sizes, so kept default for safety.)
    full = lambda arr: pl.BlockSpec(arr.shape, lambda i: (0,) * arr.ndim)

    out_p = pl.pallas_call(
        kernel,
        out_shape=jax.ShapeDtypeStruct((b_p, dout_p), dt),
        grid_spec=pl.GridSpec(
            grid=(b_p // batch_tile,),
            in_specs=[
                pl.BlockSpec((batch_tile, din_p), lambda i: (i, 0)),   # x tile
                full(w1p), full(b1p),
                full(w2p), full(b2p),
                full(w3p), full(b3p),
            ],
            out_specs=pl.BlockSpec((batch_tile, dout_p), lambda i: (i, 0)),
        ),
        compiler_params=pltpu.CompilerParams(
            dimension_semantics=("parallel",),
        ),
    )(xp, w1p, b1p, w2p, b2p, w3p, b3p)

    # Slice away batch and lane padding.
    return out_p[:B, :D_out]


def init_discriminator_params(key, input_dims, hidden_dims, output_dims):
    """Deterministic init mimicking nn.Linear's U(-1/sqrt(fan_in), 1/sqrt(fan_in)).

    Weights are returned already transposed to (in, out) for the kernel."""
    keys = jax.random.split(key, 6)

    def linear(kw, kb, fan_in, fan_out):
        bound = 1.0 / jnp.sqrt(jnp.asarray(fan_in, jnp.float32))
        w = jax.random.uniform(kw, (fan_in, fan_out), jnp.float32, -bound, bound)
        b = jax.random.uniform(kb, (1, fan_out), jnp.float32, -bound, bound)
        return w, b

    w1, b1 = linear(keys[0], keys[1], input_dims, hidden_dims)
    w2, b2 = linear(keys[2], keys[3], hidden_dims, hidden_dims)
    w3, b3 = linear(keys[4], keys[5], hidden_dims, output_dims)
    return {"w1": w1, "b1": b1, "w2": w2, "b2": b2, "w3": w3, "b3": b3}


def discriminator_ref(x, params):
    """Pure-JAX reference for correctness checking."""
    h = jnp.maximum(x @ params["w1"] + params["b1"], 0.0)
    h = jnp.maximum(h @ params["w2"] + params["b2"], 0.0)
    return h @ params["w3"] + params["b3"]


if __name__ == "__main__":
    input_dims, hidden_dims, output_dims = 32, 32, 2

    key = jax.random.PRNGKey(0)
    k_x, k_p, k_x2 = jax.random.split(key, 3)
    params = init_discriminator_params(k_p, input_dims, hidden_dims, output_dims)

    # Small check (single grid step, single chunk).
    batch = 16
    x = jax.random.normal(k_x, (batch, input_dims), jnp.float32)
    out = jax.block_until_ready(discriminator_forward(x, params))
    ref = discriminator_ref(x, params)
    assert out.shape == (batch, output_dims)
    assert jnp.allclose(out, ref, atol=1e-5, rtol=1e-5), "mismatch vs JAX reference (small)"

    # Larger check exercising multi-step grid + in-kernel chunking path.
    big_batch = 1024
    x2 = jax.random.normal(k_x2, (big_batch, input_dims), jnp.float32)
    out2 = jax.block_until_ready(discriminator_forward(x2, params))
    ref2 = discriminator_ref(x2, params)
    assert out2.shape == (big_batch, output_dims)
    assert jnp.allclose(out2, ref2, atol=1e-4, rtol=1e-4), "mismatch vs JAX reference (large)"

    print("KERNEL_OK")
</pallas_src>

<mosaic_0001>
module attributes {stable_mosaic.version = 11 : i64} {
  func.func @_mlp_kernel(%arg0: i32, %arg1: memref<16x128xf32, #tpu.memory_space<vmem>>, %arg2: memref<128x128xf32, #tpu.memory_space<vmem>>, %arg3: memref<1x128xf32, #tpu.memory_space<vmem>>, %arg4: memref<128x128xf32, #tpu.memory_space<vmem>>, %arg5: memref<1x128xf32, #tpu.memory_space<vmem>>, %arg6: memref<128x128xf32, #tpu.memory_space<vmem>>, %arg7: memref<1x128xf32, #tpu.memory_space<vmem>>, %arg8: memref<16x128xf32, #tpu.memory_space<vmem>>) attributes {dimension_semantics = [#tpu.dimension_semantics<parallel>], iteration_bounds = array<i64: 1>, scalar_prefetch = 0 : i64, scratch_operands = 0 : i64, tpu.core_type = #tpu.core_type<tc>, window_params = [{transform_indices = @transform_0, window_bounds = array<i64: 16, 128>}, {pipeline_mode = #tpu.pipeline_mode<synchronous>, transform_indices = @transform_1, window_bounds = array<i64: 128, 128>}, {pipeline_mode = #tpu.pipeline_mode<synchronous>, transform_indices = @transform_2, window_bounds = array<i64: 1, 128>}, {pipeline_mode = #tpu.pipeline_mode<synchronous>, transform_indices = @transform_3, window_bounds = array<i64: 128, 128>}, {pipeline_mode = #tpu.pipeline_mode<synchronous>, transform_indices = @transform_4, window_bounds = array<i64: 1, 128>}, {pipeline_mode = #tpu.pipeline_mode<synchronous>, transform_indices = @transform_5, window_bounds = array<i64: 128, 128>}, {pipeline_mode = #tpu.pipeline_mode<synchronous>, transform_indices = @transform_6, window_bounds = array<i64: 1, 128>}, {transform_indices = @transform_7, window_bounds = array<i64: 16, 128>}]} {
    %c0 = arith.constant 0 : index
    %c0_0 = arith.constant 0 : index
    %0 = vector.load %arg2[%c0, %c0_0] : memref<128x128xf32, #tpu.memory_space<vmem>>, vector<128x128xf32>
    %c0_1 = arith.constant 0 : index
    %c0_2 = arith.constant 0 : index
    %1 = vector.load %arg3[%c0_1, %c0_2] : memref<1x128xf32, #tpu.memory_space<vmem>>, vector<1x128xf32>
    %c0_3 = arith.constant 0 : index
    %c0_4 = arith.constant 0 : index
    %2 = vector.load %arg4[%c0_3, %c0_4] : memref<128x128xf32, #tpu.memory_space<vmem>>, vector<128x128xf32>
    %c0_5 = arith.constant 0 : index
    %c0_6 = arith.constant 0 : index
    %3 = vector.load %arg5[%c0_5, %c0_6] : memref<1x128xf32, #tpu.memory_space<vmem>>, vector<1x128xf32>
    %c0_7 = arith.constant 0 : index
    %c0_8 = arith.constant 0 : index
    %4 = vector.load %arg6[%c0_7, %c0_8] : memref<128x128xf32, #tpu.memory_space<vmem>>, vector<128x128xf32>
    %c0_9 = arith.constant 0 : index
    %c0_10 = arith.constant 0 : index
    %5 = vector.load %arg7[%c0_9, %c0_10] : memref<1x128xf32, #tpu.memory_space<vmem>>, vector<1x128xf32>
    %c0_11 = arith.constant 0 : index
    %c0_12 = arith.constant 0 : index
    %6 = vector.load %arg1[%c0_11, %c0_12] : memref<16x128xf32, #tpu.memory_space<vmem>>, vector<16x128xf32>
    %cst = arith.constant dense<0.000000e+00> : vector<16x128xf32>
    %7 = tpu.matmul %6, %0, %cst {dimension_numbers = #tpu.dot_dimension_numbers<[1], [0], [0], [1], [0, 0, 1, 1], [], []>} : vector<16x128xf32>, vector<128x128xf32>, vector<16x128xf32> -> vector<16x128xf32>
    %8 = vector.broadcast %1 : vector<1x128xf32> to vector<16x128xf32>
    %9 = arith.addf %7, %8 : vector<16x128xf32>
    %cst_13 = arith.constant 0.000000e+00 : f32
    %10 = vector.broadcast %cst_13 : f32 to vector<16x128xf32>
    %11 = arith.maximumf %9, %10 : vector<16x128xf32>
    %cst_14 = arith.constant dense<0.000000e+00> : vector<16x128xf32>
    %12 = tpu.matmul %11, %2, %cst_14 {dimension_numbers = #tpu.dot_dimension_numbers<[1], [0], [0], [1], [0, 0, 1, 1], [], []>} : vector<16x128xf32>, vector<128x128xf32>, vector<16x128xf32> -> vector<16x128xf32>
    %13 = vector.broadcast %3 : vector<1x128xf32> to vector<16x128xf32>
    %14 = arith.addf %12, %13 : vector<16x128xf32>
    %cst_15 = arith.constant 0.000000e+00 : f32
    %15 = vector.broadcast %cst_15 : f32 to vector<16x128xf32>
    %16 = arith.maximumf %14, %15 : vector<16x128xf32>
    %cst_16 = arith.constant dense<0.000000e+00> : vector<16x128xf32>
    %17 = tpu.matmul %16, %4, %cst_16 {dimension_numbers = #tpu.dot_dimension_numbers<[1], [0], [0], [1], [0, 0, 1, 1], [], []>} : vector<16x128xf32>, vector<128x128xf32>, vector<16x128xf32> -> vector<16x128xf32>
    %18 = vector.broadcast %5 : vector<1x128xf32> to vector<16x128xf32>
    %19 = arith.addf %17, %18 : vector<16x128xf32>
    %c0_17 = arith.constant 0 : index
    %c0_18 = arith.constant 0 : index
    %20 = vector.load %arg8[%c0_17, %c0_18] : memref<16x128xf32, #tpu.memory_space<vmem>>, vector<16x128xf32>
    tpu.vector_store %arg8[%c0_17, %c0_18], %19 {strides = array<i32>} : memref<16x128xf32, #tpu.memory_space<vmem>>, vector<16x128xf32>,
    return
  }
  func.func @transform_0(%arg0: i32) -> (i32, i32) {
    %c0_i32 = arith.constant 0 : i32
    %c0_i32_0 = arith.constant 0 : i32
    return %arg0, %c0_i32 : i32, i32
  }
  func.func @transform_1(%arg0: i32) -> (i32, i32) {
    %c0_i32 = arith.constant 0 : i32
    %c0_i32_0 = arith.constant 0 : i32
    %c0_i32_1 = arith.constant 0 : i32
    return %c0_i32, %c0_i32_0 : i32, i32
  }
  func.func @transform_2(%arg0: i32) -> (i32, i32) {
    %c0_i32 = arith.constant 0 : i32
    %c0_i32_0 = arith.constant 0 : i32
    %c0_i32_1 = arith.constant 0 : i32
    return %c0_i32, %c0_i32_0 : i32, i32
  }
  func.func @transform_3(%arg0: i32) -> (i32, i32) {
    %c0_i32 = arith.constant 0 : i32
    %c0_i32_0 = arith.constant 0 : i32
    %c0_i32_1 = arith.constant 0 : i32
    return %c0_i32, %c0_i32_0 : i32, i32
  }
  func.func @transform_4(%arg0: i32) -> (i32, i32) {
    %c0_i32 = arith.constant 0 : i32
    %c0_i32_0 = arith.constant 0 : i32
    %c0_i32_1 = arith.constant 0 : i32
    return %c0_i32, %c0_i32_0 : i32, i32
  }
  func.func @transform_5(%arg0: i32) -> (i32, i32) {
    %c0_i32 = arith.constant 0 : i32
    %c0_i32_0 = arith.constant 0 : i32
    %c0_i32_1 = arith.constant 0 : i32
    return %c0_i32, %c0_i32_0 : i32, i32
  }
  func.func @transform_6(%arg0: i32) -> (i32, i32) {
    %c0_i32 = arith.constant 0 : i32
    %c0_i32_0 = arith.constant 0 : i32
    %c0_i32_1 = arith.constant 0 : i32
    return %c0_i32, %c0_i32_0 : i32, i32
  }
  func.func @transform_7(%arg0: i32) -> (i32, i32) {
    %c0_i32 = arith.constant 0 : i32
    %c0_i32_0 = arith.constant 0 : i32
    return %arg0, %c0_i32 : i32, i32
  }
}

</mosaic_0001>

<bundles_post_ra>
// kernel: discriminator_forward.1
= control target key start
LH: loop header
LB: loop body
LE: loop exit
PB: predicated region body
PF: predicated region fallthrough
CT: control target
= control target key end

     0   :  { %s795_s1 = inlined_call_operand.vmem [shape: f32[128,128], index: 1, kind: input, shape index: {}]   ;;  %s796_s0 = inlined_call_operand.vmem [shape: f32[16,128], index: 0, kind: input, shape index: {}]   ;;  %s797_s3 = inlined_call_operand.vmem [shape: f32[128,128], index: 3, kind: input, shape index: {}]   ;;  %s798_s5 = inlined_call_operand.vmem [shape: f32[128,128], index: 5, kind: input, shape index: {}]   ;;  %s799_s2 = inlined_call_operand.vmem [shape: f32[1,128], index: 2, kind: input, shape index: {}]   ;;  %s800_s4 = inlined_call_operand.vmem [shape: f32[1,128], index: 4, kind: input, shape index: {}]   ;;  %s801_s6 = inlined_call_operand.vmem [shape: f32[1,128], index: 6, kind: input, shape index: {}]   ;;  %s802_s7 = inlined_call_operand.vmem [shape: f32[16,128], index: 7, kind: output, shape index: {}]  }
   0x1   :  { %v26_v0 = vld [vmem:[%s795_s1] sm:$0xff]  ;;  %v27_v1 = vld [vmem:[%s795_s1 + $0x8] sm:$0xff]  ;;  %v28_v2 = vld [vmem:[%s795_s1 + $0x10] sm:$0xff] }
   0x2   :  { %v494_v3 = vpack.c.bf16 %v27_v1, %v26_v0  ;;  %v29_v4 = vld [vmem:[%s795_s1 + $0x18] sm:$0xff]  ;;  %v30_v6 = vld [vmem:[%s795_s1 + $0x20] sm:$0xff]  ;;  %v31_v7 = vld [vmem:[%s795_s1 + $0x28] sm:$0xff] }
   0x3   :  { %v498_v5 = vpack.c.bf16 %v29_v4, %v28_v2  ;;  %v502_v8 = vpack.c.bf16 %v31_v7, %v30_v6  ;;  %v32_v9 = vld [vmem:[%s795_s1 + $0x30] sm:$0xff]  ;;  %v33_v10 = vld [vmem:[%s795_s1 + $0x38] sm:$0xff]  ;;  %v77_v11 = vld [vmem:[%s796_s0] sm:$0xff] }
   0x4   :  { %495 = vmatprep.subr.bf16.mxu0 %v494_v3  ;;  %421 = vmatprep.mubr.f32.mxu0 %v77_v11  ;;  %v43_v12 = vld [vmem:[%s797_s3] sm:$0xff]  ;;  %v44_v13 = vld [vmem:[%s797_s3 + $0x8] sm:$0xff]  ;;  %v45_v14 = vld [vmem:[%s797_s3 + $0x10] sm:$0xff]  ;;  %v506_v20 = vpack.c.bf16 %v33_v10, %v32_v9 }
   0x5   :  { %497 = vmatpush3.bf16.msra.mxu0 %v494_v3  ;;  %v526_v15 = vpack.c.bf16 %v44_v13, %v43_v12  ;;  %v46_v16 = vld [vmem:[%s797_s3 + $0x18] sm:$0xff]  ;;  %v47_v18 = vld [vmem:[%s797_s3 + $0x20] sm:$0xff]  ;;  %v48_v19 = vld [vmem:[%s797_s3 + $0x28] sm:$0xff] }
   0x6   :  { %499 = vmatprep.subr.bf16.mxu0 %v498_v5  ;;  %v530_v17 = vpack.c.bf16 %v46_v16, %v45_v14  ;;  %v34_v21 = vld [vmem:[%s795_s1 + $0x40] sm:$0xff]  ;;  %v35_v22 = vld [vmem:[%s795_s1 + $0x48] sm:$0xff]  ;;  %v534_v23 = vpack.c.bf16 %v48_v19, %v47_v18  ;;  %v49_v24 = vld [vmem:[%s797_s3 + $0x30] sm:$0xff] }
   0x7   :  { %527 = vmatprep.subr.bf16.mxu1 %v526_v15  ;;  %v50_v25 = vld [vmem:[%s797_s3 + $0x38] sm:$0xff]  ;;  %v510_v26 = vpack.c.bf16 %v35_v22, %v34_v21  ;;  %v36_v27 = vld [vmem:[%s795_s1 + $0x50] sm:$0xff]  ;;  %v51_v30 = vld [vmem:[%s797_s3 + $0x40] sm:$0xff] }
   0x8   :  { %529 = vmatpush3.bf16.msra.mxu1 %v526_v15  ;;  %v37_v28 = vld [vmem:[%s795_s1 + $0x58] sm:$0xff]  ;;  %v538_v29 = vpack.c.bf16 %v50_v25, %v49_v24  ;;  %v52_v31 = vld [vmem:[%s797_s3 + $0x48] sm:$0xff]  ;;  %v38_v33 = vld [vmem:[%s795_s1 + $0x60] sm:$0xff] }
   0x9   :  { %501 = vmatpush3.bf16.msra.mxu0 %v498_v5  ;;  %531 = vmatprep.subr.bf16.mxu1 %v530_v17  ;;  %v514_v32 = vpack.c.bf16 %v37_v28, %v36_v27  ;;  %v39_v34 = vld [vmem:[%s795_s1 + $0x68] sm:$0xff]  ;;  %v542_v35 = vpack.c.bf16 %v52_v31, %v51_v30  ;;  %v53_v36 = vld [vmem:[%s797_s3 + $0x50] sm:$0xff]  ;;  %v54_v37 = vld [vmem:[%s797_s3 + $0x58] sm:$0xff] }
   0xa   :  { %503 = vmatprep.subr.bf16.mxu0 %v502_v8  ;;  %v518_v38 = vpack.c.bf16 %v39_v34, %v38_v33  ;;  %v40_v39 = vld [vmem:[%s795_s1 + $0x70] sm:$0xff]  ;;  %v41_v40 = vld [vmem:[%s795_s1 + $0x78] sm:$0xff]  ;;  %v546_v41 = vpack.c.bf16 %v54_v37, %v53_v36  ;;  %v55_v42 = vld [vmem:[%s797_s3 + $0x60] sm:$0xff] }
   0xb   :  { %v56_v43 = vld [vmem:[%s797_s3 + $0x68] sm:$0xff]  ;;  %v522_v44 = vpack.c.bf16 %v41_v40, %v40_v39  ;;  %v57_v47 = vld [vmem:[%s797_s3 + $0x70] sm:$0xff]  ;;  %v58_v48 = vld [vmem:[%s797_s3 + $0x78] sm:$0xff] }
   0xc   :  { %533 = vmatpush3.bf16.msra.mxu1 %v530_v17  ;;  %v550_v45 = vpack.c.bf16 %v56_v43, %v55_v42  ;;  %v78_v46 = vld [vmem:[%s796_s0 + $0x8] sm:$0xff]  ;;  %v554_v49 = vpack.c.bf16 %v58_v48, %v57_v47  ;;  %v60_v50 = vld [vmem:[%s798_s5] sm:$0xff]  ;;  %v62_v52 = vld [vmem:[%s798_s5 + $0x10] sm:$0xff] }
   0xd   :  { %505 = vmatpush3.bf16.msra.mxu0 %v502_v8  ;;  %535 = vmatprep.subr.bf16.mxu1 %v534_v23  ;;  %v61_v51 = vld [vmem:[%s798_s5 + $0x8] sm:$0xff]  ;;  %v63_v54 = vld [vmem:[%s798_s5 + $0x18] sm:$0xff]  ;;  %v64_v56 = vld [vmem:[%s798_s5 + $0x20] sm:$0xff] }
   0xe   :  { %507 = vmatprep.subr.bf16.mxu0 %v506_v20  ;;  %v558_v53 = vpack.c.bf16 %v61_v51, %v60_v50  ;;  %v562_v55 = vpack.c.bf16 %v63_v54, %v62_v52  ;;  %v65_v57 = vld [vmem:[%s798_s5 + $0x28] sm:$0xff]  ;;  %v66_v59 = vld [vmem:[%s798_s5 + $0x30] sm:$0xff]  ;;  %v67_v60 = vld [vmem:[%s798_s5 + $0x38] sm:$0xff] }
   0xf   :  { %v566_v58 = vpack.c.bf16 %v65_v57, %v64_v56  ;;  %v570_v61 = vpack.c.bf16 %v67_v60, %v66_v59  ;;  %v68_v62 = vld [vmem:[%s798_s5 + $0x40] sm:$0xff]  ;;  %v69_v63 = vld [vmem:[%s798_s5 + $0x48] sm:$0xff]  ;;  %v70_v1 = vld [vmem:[%s798_s5 + $0x50] sm:$0xff] }
  0x10   :  { %537 = vmatpush3.bf16.msra.mxu1 %v534_v23  ;;  %v574_v0 = vpack.c.bf16 %v69_v63, %v68_v62  ;;  %v71_v2 = vld [vmem:[%s798_s5 + $0x58] sm:$0xff]  ;;  %v72_v4 = vld [vmem:[%s798_s5 + $0x60] sm:$0xff]  ;;  %v73_v5 = vld [vmem:[%s798_s5 + $0x68] sm:$0xff] }
  0x11   :  { %509 = vmatpush3.bf16.msra.mxu0 %v506_v20  ;;  %539 = vmatprep.subr.bf16.mxu1 %v538_v29  ;;  %v578_v3 = vpack.c.bf16 %v71_v2, %v70_v1  ;;  %v582_v6 = vpack.c.bf16 %v73_v5, %v72_v4  ;;  %v332_v7 = vld [vmem:[%s799_s2] ss:$0 sm:$0xff]  ;;  %v74_v14 = vld [vmem:[%s798_s5 + $0x70] sm:$0xff]  ;;  %v75_v15 = vld [vmem:[%s798_s5 + $0x78] sm:$0xff] }
  0x12   :  { %511 = vmatprep.subr.bf16.mxu0 %v510_v26  ;;  %v586_v16 = vpack.c.bf16 %v75_v15, %v74_v14  ;;  %v333_v17 = vld [vmem:[%s800_s4] ss:$0 sm:$0xff] }
  0x13   :  { %v334_v24 = vld [vmem:[%s801_s6] ss:$0 sm:$0xff] }
  0x14   :  { %541 = vmatpush3.bf16.msra.mxu1 %v538_v29 }
  0x15   :  { %513 = vmatpush3.bf16.msra.mxu0 %v510_v26  ;;  %543 = vmatprep.subr.bf16.mxu1 %v542_v35 }
  0x16   :  { %515 = vmatprep.subr.bf16.mxu0 %v514_v32 }
  0x18   :  { %545 = vmatpush3.bf16.msra.mxu1 %v542_v35 }
  0x19   :  { %517 = vmatpush3.bf16.msra.mxu0 %v514_v32  ;;  %547 = vmatprep.subr.bf16.mxu1 %v546_v41 }
  0x1a   :  { %519 = vmatprep.subr.bf16.mxu0 %v518_v38 }
  0x1c   :  { %549 = vmatpush3.bf16.msra.mxu1 %v546_v41 }
  0x1d   :  { %521 = vmatpush3.bf16.msra.mxu0 %v518_v38  ;;  %551 = vmatprep.subr.bf16.mxu1 %v550_v45 }
  0x1e   :  { %523 = vmatprep.subr.bf16.mxu0 %v522_v44 }
  0x20   :  { %553 = vmatpush3.bf16.msra.mxu1 %v550_v45 }
  0x21   :  { %525 = vmatpush3.bf16.msra.mxu0 %v522_v44  ;;  %555 = vmatprep.subr.bf16.mxu1 %v554_v49 }
  0x22   :  { %559 = vmatprep.subr.bf16.mxu0 %v558_v53 }
  0x24   :  { %422 = vmatmul.mubr.f32.vlgmr.msra.gmra.mrb[0].mxu0 %v78_v46  ;;  %557 = vmatpush3.bf16.msra.mxu1 %v554_v49 }
  0x25   :  { %561 = vmatpush3.bf16.msra.mxu0 %v558_v53 }
  0x26   :  { %563 = vmatprep.subr.bf16.mxu0 %v562_v55 }
  0x29   :  { %565 = vmatpush3.bf16.msra.mxu0 %v562_v55 }
  0x2a   :  { %567 = vmatprep.subr.bf16.mxu0 %v566_v58 }
  0x2d   :  { %569 = vmatpush3.bf16.msra.mxu0 %v566_v58 }
  0x2e   :  { %571 = vmatprep.subr.bf16.mxu0 %v570_v61 }
  0x31   :  { %573 = vmatpush3.bf16.msra.mxu0 %v570_v61 }
  0x32   :  { %575 = vmatprep.subr.bf16.mxu0 %v574_v0 }
  0x35   :  { %577 = vmatpush3.bf16.msra.mxu0 %v574_v0 }
  0x36   :  { %579 = vmatprep.subr.bf16.mxu0 %v578_v3 }
  0x39   :  { %581 = vmatpush3.bf16.msra.mxu0 %v578_v3 }
  0x3a   :  { %583 = vmatprep.subr.bf16.mxu0 %v582_v6 }
  0x3d   :  { %585 = vmatpush3.bf16.msra.mxu0 %v582_v6 }
  0x3e   :  { %587 = vmatprep.subr.bf16.mxu0 %v586_v16 }
  0x41   :  { %589 = vmatpush3.bf16.msra.mxu0 %v586_v16 }
  0xf7   :  { %v423_v8 = vpop.f32.mrb[0].mxu0 }
  0xf8   :  { %v157_v9 = vadd.f32 %v423_v8, %v332_v7  ;;  %v151_v10 = vpop.f32.mrb[1].mxu0 }
  0xf9   :  { %v152_v11 = vadd.f32 %v332_v7, %v151_v10 }
  0xfa   :  { %v161_v13 = vmax.f32 %v157_v9, 0.0 }
  0xfb   :  { %v160_v12 = vmax.f32 %v152_v11, 0.0 }
  0xfd   :  { %456 = vmatprep.mubr.f32.mxu1 %v160_v12 }
  0xfe   :  { %457 = vmatmul.mubr.f32.vlgmr.msra.gmra.mrb[0].mxu1 %v161_v13 }
 0x1d1   :  { %v458_v18 = vpop.f32.mrb[0].mxu1 }
 0x1d2   :  { %v240_v19 = vadd.f32 %v458_v18, %v333_v17  ;;  %v234_v20 = vpop.f32.mrb[1].mxu1 }
 0x1d3   :  { %v235_v21 = vadd.f32 %v333_v17, %v234_v20 }
 0x1d4   :  { %v244_v23 = vmax.f32 %v240_v19, 0.0 }
 0x1d5   :  { %v243_v22 = vmax.f32 %v235_v21, 0.0 }
 0x1d7   :  { %491 = vmatprep.mubr.f32.mxu0 %v243_v22 }
 0x1d8   :  { %492 = vmatmul.mubr.f32.vlgmr.msra.gmra.mrb[2].mxu0 %v244_v23 }
 0x2ab   :  { %v493_v25 = vpop.f32.mrb[2].mxu0 }
 0x2ac   :  { %v323_v26 = vadd.f32 %v493_v25, %v334_v24  ;;  %v317_v27 = vpop.f32.mrb[3].mxu0 }
 0x2ad   :  { %v318_v28 = vadd.f32 %v334_v24, %v317_v27 }
 0x2ae   :  { %327 = vst [vmem:[%s802_s7 + $0x8] sm:$0xff] %v323_v26 }
 0x2af   :  { %326 = vst [vmem:[%s802_s7] sm:$0xff] %v318_v28 }

</bundles_post_ra>
